<compile_context>
chip_gen: v6e
topology: v6e:2x2x1
jax: 0.10.0
libtpu: 0.0.40
codegen_flags: <defaults>
</compile_context>

<pallas_src>
import functools

import jax
import jax.numpy as jnp
from jax.experimental import pallas as pl
from jax.experimental.pallas import tpu as pltpu


# Minimal ACT2FN equivalent for the activations LongLlama uses.
_ACT2FN = {
    "silu": lambda v: v * jax.nn.sigmoid(v),
    "gelu": jax.nn.gelu,
    "relu": jax.nn.relu,
}


def _round_up(x, m):
    return ((x + m - 1) // m) * m


def _sublane_min(dtype):
    """Minimum sublane extent for a packed tile of this dtype (8/16/32)."""
    bits = jnp.dtype(dtype).itemsize * 8
    return max(8, 256 // bits)


def _vmem_cap_bytes():
    try:
        return int(pltpu.get_tpu_info().vmem_capacity_bytes)
    except Exception:
        return 64 * 1024 * 1024  # conservative fallback (v7x per-TC VMEM)


def _mlp_kernel(x_ref, wg_ref, wu_ref, wd_ref, o_ref, acc_ref, *, act_name, dot_dtype):
    # x_ref:   (tm, H)       token tile (resident across the k axis)
    # wg_ref:  (H, ti)       gate_proj weight tile k
    # wu_ref:  (H, ti)       up_proj weight tile k
    # wd_ref:  (ti, H)       down_proj weight tile k
    # o_ref:   (tm, H)       output tile (resident across the k axis)
    # acc_ref: (tm, H) f32   down_proj accumulator
    k = pl.program_id(1)

    @pl.when(k == 0)
    def _():
        acc_ref[...] = jnp.zeros_like(acc_ref)

    x = x_ref[...]
    g = jnp.dot(x, wg_ref[...], preferred_element_type=jnp.float32)
    u = jnp.dot(x, wu_ref[...], preferred_element_type=jnp.float32)
    h = _ACT2FN[act_name](g) * u  # f32 elementwise; sigmoid goes to the EUP slot.
    # Partial down_proj contribution of this I-tile, accumulated in f32.
    acc_ref[...] += jnp.dot(h.astype(dot_dtype), wd_ref[...],
                            preferred_element_type=jnp.float32)

    @pl.when(k == pl.num_programs(1) - 1)
    def _():
        o_ref[...] = acc_ref[...].astype(o_ref.dtype)


def longllama_mlp(x, gate_w, up_w, down_w, *, hidden_act="silu",
                  tm=512, ti=512, compute_dtype=None):
    """LongLlamaMLP forward.

    x:       (B, S, H)
    gate_w:  (H, I)   gate_proj weight, (in_features, out_features) orientation
    up_w:    (H, I)   up_proj weight
    down_w:  (I, H)   down_proj weight
    compute_dtype: dtype for the matmul operands (e.g. jnp.bfloat16);
                   defaults to x.dtype. Accumulation is always f32.
    Returns (B, S, H) in x.dtype.
    """
    B, S, H = x.shape
    I = gate_w.shape[1]
    M = B * S
    out_dtype = x.dtype
    cdtype = jnp.dtype(compute_dtype) if compute_dtype is not None else jnp.dtype(x.dtype)
    isz = jnp.dtype(cdtype).itemsize
    osz = jnp.dtype(out_dtype).itemsize

    # ---- per-chip tile caps -----------------------------------------------
    vmem_cap = _vmem_cap_bytes()
    if vmem_cap <= 64 * 1024 * 1024:      # v7x-class: 64 MiB per-TC VMEM
        tm = min(tm, 512)
        ti = min(ti, 256)
    else:                                  # v5e / v6e: 128 MiB VMEM
        tm = min(tm, 1024)

    # ---- tile selection -----------------------------------------------------
    sub = _sublane_min(cdtype)
    tm = max(sub, _round_up(min(tm, _round_up(M, sub)), sub))
    M_pad = _round_up(M, tm)

    # I-tile: multiple of 128 <= requested; pad I up to a multiple of ti
    # (exact: act(0)*0 == 0, padded down_proj rows are zero).
    I_ceil = _round_up(I, 128)
    ti = min(max(128, (ti // 128) * 128), I_ceil)
    I_pad = _round_up(I, ti)
    nk = I_pad // ti

    # ---- operand preparation (layout only; all conditional / no-ops at
    #      real model sizes when dtypes & divisibility already match) ---------
    x2d = x.reshape(M, H)
    if x2d.dtype != cdtype:
        x2d = x2d.astype(cdtype)
    if M_pad != M:
        x2d = jnp.pad(x2d, ((0, M_pad - M), (0, 0)))

    if gate_w.dtype != cdtype:
        gate_w = gate_w.astype(cdtype)
    if up_w.dtype != cdtype:
        up_w = up_w.astype(cdtype)
    if down_w.dtype != cdtype:
        down_w = down_w.astype(cdtype)
    if I_pad != I:
        gate_w = jnp.pad(gate_w, ((0, 0), (0, I_pad - I)))
        up_w = jnp.pad(up_w, ((0, 0), (0, I_pad - I)))
        down_w = jnp.pad(down_w, ((0, I_pad - I), (0, 0)))

    # ---- VMEM budgeting (exact footprint + margin, capped by capacity) ------
    tile_bytes = (tm * H * isz          # x tile
                  + 2 * H * ti * isz    # gate + up weight tiles
                  + ti * H * isz        # down weight tile
                  + tm * H * osz)       # output tile
    needed = 2 * tile_bytes + tm * H * 4           # double-buffered + f32 acc
    vmem_limit = int(min(int(vmem_cap * 0.9), needed + 4 * 1024 * 1024))
    vmem_limit = max(vmem_limit, 16 * 1024 * 1024)

    n_token_tiles = M_pad // tm
    cost = pl.CostEstimate(
        flops=6 * M_pad * H * I_pad,              # 3 matmuls of M*H*I MACs
        transcendentals=M_pad * I_pad,            # sigmoid
        bytes_accessed=(M_pad * H * isz           # x read once per token tile
                        + M_pad * H * osz         # output written once
                        + n_token_tiles * 3 * H * I_pad * isz),  # weights re-streamed
    )

    kernel = functools.partial(_mlp_kernel, act_name=hidden_act, dot_dtype=cdtype)

    out2d = pl.pallas_call(
        kernel,
        out_shape=jax.ShapeDtypeStruct((M_pad, H), out_dtype),
        grid_spec=pltpu.PrefetchScalarGridSpec(
            num_scalar_prefetch=0,
            grid=(n_token_tiles, nk),  # (parallel token tiles, I reduction tiles)
            in_specs=[
                pl.BlockSpec((tm, H), lambda i, k: (i, 0)),   # token tile
                pl.BlockSpec((H, ti), lambda i, k: (0, k)),   # gate_proj tile
                pl.BlockSpec((H, ti), lambda i, k: (0, k)),   # up_proj tile
                pl.BlockSpec((ti, H), lambda i, k: (k, 0)),   # down_proj tile
            ],
            out_specs=pl.BlockSpec((tm, H), lambda i, k: (i, 0)),
            scratch_shapes=[pltpu.VMEM((tm, H), jnp.float32)],
        ),
        compiler_params=pltpu.CompilerParams(
            dimension_semantics=("parallel", "arbitrary"),
            vmem_limit_bytes=vmem_limit,
        ),
        cost_estimate=cost,
    )(x2d, gate_w, up_w, down_w)

    return out2d[:M].reshape(B, S, H)


def longllama_mlp_ref(x, gate_w, up_w, down_w, hidden_act="silu"):
    g = jnp.einsum("bsh,hi->bsi", x, gate_w)
    u = jnp.einsum("bsh,hi->bsi", x, up_w)
    h = _ACT2FN[hidden_act](g) * u
    return jnp.einsum("bsi,ih->bsh", h, down_w)


if __name__ == "__main__":
    B, S = 2, 8
    hidden_size = 64
    intermediate_size = 128
    hidden_act = "silu"

    key = jax.random.PRNGKey(0)
    kx, kg, ku, kd = jax.random.split(key, 4)

    x = jax.random.normal(kx, (B, S, hidden_size), dtype=jnp.float32)
    # Deterministic synthetic weights, stored as (in_features, out_features).
    gate_w = jax.random.normal(kg, (hidden_size, intermediate_size), jnp.float32) * 0.05
    up_w = jax.random.normal(ku, (hidden_size, intermediate_size), jnp.float32) * 0.05
    down_w = jax.random.normal(kd, (intermediate_size, hidden_size), jnp.float32) * 0.05

    out = longllama_mlp(x, gate_w, up_w, down_w, hidden_act=hidden_act)
    out = jax.block_until_ready(out)

    ref = longllama_mlp_ref(x, gate_w, up_w, down_w, hidden_act=hidden_act)
    assert out.shape == (B, S, hidden_size)
    assert jnp.allclose(out, ref, atol=1e-4, rtol=1e-4), "mismatch vs reference"

    print("KERNEL_OK")
</pallas_src>

<mosaic_0001>
module attributes {stable_mosaic.version = 11 : i64} {
  func.func @_mlp_kernel(%arg0: i32, %arg1: i32, %arg2: memref<16x64xf32, #tpu.memory_space<vmem>>, %arg3: memref<64x128xf32, #tpu.memory_space<vmem>>, %arg4: memref<64x128xf32, #tpu.memory_space<vmem>>, %arg5: memref<128x64xf32, #tpu.memory_space<vmem>>, %arg6: memref<16x64xf32, #tpu.memory_space<vmem>>, %arg7: memref<16x64xf32, #tpu.memory_space<vmem>>) attributes {dimension_semantics = [#tpu.dimension_semantics<parallel>, #tpu.dimension_semantics<arbitrary>], iteration_bounds = array<i64: 1, 1>, scalar_prefetch = 0 : i64, scratch_operands = 1 : i64, tpu.core_type = #tpu.core_type<tc>, window_params = [{transform_indices = @transform_0, window_bounds = array<i64: 16, 64>}, {transform_indices = @transform_1, window_bounds = array<i64: 64, 128>}, {transform_indices = @transform_2, window_bounds = array<i64: 64, 128>}, {transform_indices = @transform_3, window_bounds = array<i64: 128, 64>}, {transform_indices = @transform_4, window_bounds = array<i64: 16, 64>}]} {
    %c0_i32 = arith.constant 0 : i32
    %0 = arith.cmpi eq, %arg1, %c0_i32 : i32
    %1 = arith.extui %0 : i1 to i32
    %c0_i32_0 = arith.constant 0 : i32
    %2 = arith.cmpi ne, %1, %c0_i32_0 : i32
    scf.if %2 {
      %cst_17 = arith.constant 0.000000e+00 : f32
      %23 = vector.broadcast %cst_17 : f32 to vector<16x64xf32>
      %c0_18 = arith.constant 0 : index
      %c0_19 = arith.constant 0 : index
      %24 = vector.load %arg7[%c0_18, %c0_19] : memref<16x64xf32, #tpu.memory_space<vmem>>, vector<16x64xf32>
      tpu.vector_store %arg7[%c0_18, %c0_19], %23 {strides = array<i32>} : memref<16x64xf32, #tpu.memory_space<vmem>>, vector<16x64xf32>,
    } else {
    }
    %c0 = arith.constant 0 : index
    %c0_1 = arith.constant 0 : index
    %3 = vector.load %arg2[%c0, %c0_1] : memref<16x64xf32, #tpu.memory_space<vmem>>, vector<16x64xf32>
    %c0_2 = arith.constant 0 : index
    %c0_3 = arith.constant 0 : index
    %4 = vector.load %arg3[%c0_2, %c0_3] : memref<64x128xf32, #tpu.memory_space<vmem>>, vector<64x128xf32>
    %cst = arith.constant dense<0.000000e+00> : vector<16x128xf32>
    %5 = tpu.matmul %3, %4, %cst {dimension_numbers = #tpu.dot_dimension_numbers<[1], [0], [0], [1], [0, 0, 1, 1], [], []>} : vector<16x64xf32>, vector<64x128xf32>, vector<16x128xf32> -> vector<16x128xf32>
    %c0_4 = arith.constant 0 : index
    %c0_5 = arith.constant 0 : index
    %6 = vector.load %arg4[%c0_4, %c0_5] : memref<64x128xf32, #tpu.memory_space<vmem>>, vector<64x128xf32>
    %cst_6 = arith.constant dense<0.000000e+00> : vector<16x128xf32>
    %7 = tpu.matmul %3, %6, %cst_6 {dimension_numbers = #tpu.dot_dimension_numbers<[1], [0], [0], [1], [0, 0, 1, 1], [], []>} : vector<16x64xf32>, vector<64x128xf32>, vector<16x128xf32> -> vector<16x128xf32>
    %8 = arith.negf %5 : vector<16x128xf32>
    %9 = math.exp %8 : vector<16x128xf32>
    %cst_7 = arith.constant 1.000000e+00 : f32
    %10 = vector.broadcast %cst_7 : f32 to vector<16x128xf32>
    %11 = arith.addf %10, %9 : vector<16x128xf32>
    %12 = arith.divf %10, %11 : vector<16x128xf32>
    %13 = arith.mulf %5, %12 : vector<16x128xf32>
    %14 = arith.mulf %13, %7 : vector<16x128xf32>
    %c0_8 = arith.constant 0 : index
    %c0_9 = arith.constant 0 : index
    %15 = vector.load %arg7[%c0_8, %c0_9] : memref<16x64xf32, #tpu.memory_space<vmem>>, vector<16x64xf32>
    %c0_10 = arith.constant 0 : index
    %c0_11 = arith.constant 0 : index
    %16 = vector.load %arg5[%c0_10, %c0_11] : memref<128x64xf32, #tpu.memory_space<vmem>>, vector<128x64xf32>
    %cst_12 = arith.constant dense<0.000000e+00> : vector<16x64xf32>
    %17 = tpu.matmul %14, %16, %cst_12 {dimension_numbers = #tpu.dot_dimension_numbers<[1], [0], [0], [1], [0, 0, 1, 1], [], []>} : vector<16x128xf32>, vector<128x64xf32>, vector<16x64xf32> -> vector<16x64xf32>
    %18 = arith.addf %15, %17 : vector<16x64xf32>
    %c0_13 = arith.constant 0 : index
    %c0_14 = arith.constant 0 : index
    %19 = vector.load %arg7[%c0_13, %c0_14] : memref<16x64xf32, #tpu.memory_space<vmem>>, vector<16x64xf32>
    tpu.vector_store %arg7[%c0_13, %c0_14], %18 {strides = array<i32>} : memref<16x64xf32, #tpu.memory_space<vmem>>, vector<16x64xf32>,
    %c0_i32_15 = arith.constant 0 : i32
    %20 = arith.cmpi eq, %arg1, %c0_i32_15 : i32
    %21 = arith.extui %20 : i1 to i32
    %c0_i32_16 = arith.constant 0 : i32
    %22 = arith.cmpi ne, %21, %c0_i32_16 : i32
    scf.if %22 {
      %c0_17 = arith.constant 0 : index
      %c0_18 = arith.constant 0 : index
      %23 = vector.load %arg7[%c0_17, %c0_18] : memref<16x64xf32, #tpu.memory_space<vmem>>, vector<16x64xf32>
      %c0_19 = arith.constant 0 : index
      %c0_20 = arith.constant 0 : index
      %24 = vector.load %arg6[%c0_19, %c0_20] : memref<16x64xf32, #tpu.memory_space<vmem>>, vector<16x64xf32>
      tpu.vector_store %arg6[%c0_19, %c0_20], %23 {strides = array<i32>} : memref<16x64xf32, #tpu.memory_space<vmem>>, vector<16x64xf32>,
    } else {
    }
    return
  }
  func.func @transform_0(%arg0: i32, %arg1: i32) -> (i32, i32) {
    %c0_i32 = arith.constant 0 : i32
    %c0_i32_0 = arith.constant 0 : i32
    return %arg0, %c0_i32 : i32, i32
  }
  func.func @transform_1(%arg0: i32, %arg1: i32) -> (i32, i32) {
    %c0_i32 = arith.constant 0 : i32
    %c0_i32_0 = arith.constant 0 : i32
    return %c0_i32, %arg1 : i32, i32
  }
  func.func @transform_2(%arg0: i32, %arg1: i32) -> (i32, i32) {
    %c0_i32 = arith.constant 0 : i32
    %c0_i32_0 = arith.constant 0 : i32
    return %c0_i32, %arg1 : i32, i32
  }
  func.func @transform_3(%arg0: i32, %arg1: i32) -> (i32, i32) {
    %c0_i32 = arith.constant 0 : i32
    %c0_i32_0 = arith.constant 0 : i32
    return %arg1, %c0_i32 : i32, i32
  }
  func.func @transform_4(%arg0: i32, %arg1: i32) -> (i32, i32) {
    %c0_i32 = arith.constant 0 : i32
    %c0_i32_0 = arith.constant 0 : i32
    return %arg0, %c0_i32 : i32, i32
  }
}

</mosaic_0001>

<bundles_post_ra>
// kernel: tpu_custom_call.1
= control target key start
LH: loop header
LB: loop body
LE: loop exit
PB: predicated region body
PF: predicated region fallthrough
CT: control target
= control target key end

     0   :  { %vm22_vm0 = vcmask 523264   ;;  %s631_s0 = inlined_call_operand.vmem [shape: f32[16,64], index: 0, kind: input, shape index: {}]   ;;  %s632_s1 = inlined_call_operand.vmem [shape: f32[64,128], index: 1, kind: input, shape index: {}]   ;;  %s633_s2 = inlined_call_operand.vmem [shape: f32[64,128], index: 2, kind: input, shape index: {}]   ;;  %s634_s3 = inlined_call_operand.vmem [shape: f32[128,64], index: 3, kind: input, shape index: {}]   ;;  %s635_s4 = inlined_call_operand.hbm [shape: f32[16,64], index: 4, kind: output, shape index: {}]  }
   0x1   :  { %v34_v0 = vld [vmem:[%s632_s1 + $0x38] sm:$0xff]  ;;  %v33_v1 = vld [vmem:[%s632_s1 + $0x30] sm:$0xff]  ;;  %v32_v2 = vld [vmem:[%s632_s1 + $0x28] sm:$0xff] }
   0x2   :  { %380 = vmatprep.subr.mxu1 %v34_v0  ;;  %v25_v3 = vld [vmem:[%s631_s0] sm:$0xff]  ;;  %v30_v5 = vld [vmem:[%s632_s1 + $0x18] sm:$0xff] }
   0x3   :  { %381 = vmatpush3.msra.mxu1 %v34_v0  ;;  %396 = vmatprep.mubr.msk.f32.mxu1 %vm22_vm0, %v25_v3  ;;  %v31_v4 = vld [vmem:[%s632_s1 + $0x20] sm:$0xff] }
   0x4   :  { %382 = vmatprep.subr.mxu1 %v33_v1 }
   0x5   :  { %383 = vmatpush3.msra.mxu1 %v33_v1 }
   0x6   :  { %384 = vmatprep.subr.mxu1 %v32_v2 }
   0x7   :  { %385 = vmatpush3.msra.mxu1 %v32_v2 }
   0x8   :  { %9 = vsyncpa [#allocation4], 0  ;;  %386 = vmatprep.subr.mxu1 %v31_v4  ;;  %v29_v6 = vld [vmem:[%s632_s1 + $0x10] sm:$0xff]  ;;  %v28_v7 = vld [vmem:[%s632_s1 + $0x8] sm:$0xff]  ;;  %v487_v34 = vmov 0.0  }
   0x9   :  { %387 = vmatpush3.msra.mxu1 %v31_v4  ;;  %v27_v8 = vld [vmem:[%s632_s1] sm:$0xff]  ;;  %v26_v9 = vld [vmem:[%s631_s0 + $0x8] sm:$0xff]  ;;  %v124_v10 = vld [vmem:[%s633_s2 + $0x38] sm:$0xff]  ;;  %24 = vst.msk [vmem:[#allocation2 + $0x8] sm:$0xff] %vm22_vm0, %v487_v34 }
   0xa   :  { %388 = vmatprep.subr.mxu1 %v30_v5  ;;  %v123_v11 = vld [vmem:[%s633_s2 + $0x30] sm:$0xff]  ;;  %v122_v12 = vld [vmem:[%s633_s2 + $0x28] sm:$0xff]  ;;  %v121_v13 = vld [vmem:[%s633_s2 + $0x20] sm:$0xff]  ;;  %23 = vst.msk [vmem:[#allocation2] sm:$0xff] %vm22_vm0, %v487_v34 }
   0xb   :  { %389 = vmatpush3.msra.mxu1 %v30_v5  ;;  %v120_v14 = vld [vmem:[%s633_s2 + $0x18] sm:$0xff]  ;;  %v119_v15 = vld [vmem:[%s633_s2 + $0x10] sm:$0xff]  ;;  %v118_v16 = vld [vmem:[%s633_s2 + $0x8] sm:$0xff] }
   0xc   :  { %390 = vmatprep.subr.mxu1 %v29_v6  ;;  %v117_v17 = vld [vmem:[%s633_s2] sm:$0xff]  ;;  %v233_v18 = vld [vmem:[%s634_s3 + $0x78] sm:$0xff]  ;;  %v232_v19 = vld [vmem:[%s634_s3 + $0x70] sm:$0xff] }
   0xd   :  { %391 = vmatpush3.msra.mxu1 %v29_v6  ;;  %418 = vmatprep.subr.mxu0 %v233_v18  ;;  %v231_v20 = vld [vmem:[%s634_s3 + $0x68] sm:$0xff]  ;;  %v230_v21 = vld [vmem:[%s634_s3 + $0x60] sm:$0xff]  ;;  %v229_v22 = vld [vmem:[%s634_s3 + $0x58] sm:$0xff] }
   0xe   :  { %392 = vmatprep.subr.mxu1 %v28_v7  ;;  %419 = vmatpush3.msra.mxu0 %v233_v18  ;;  %v228_v23 = vld [vmem:[%s634_s3 + $0x50] sm:$0xff]  ;;  %v227_v24 = vld [vmem:[%s634_s3 + $0x48] sm:$0xff]  ;;  %v226_v25 = vld [vmem:[%s634_s3 + $0x40] sm:$0xff] }
   0xf   :  { %393 = vmatpush3.msra.mxu1 %v28_v7  ;;  %420 = vmatprep.subr.mxu0 %v232_v19  ;;  %v225_v26 = vld [vmem:[%s634_s3 + $0x38] sm:$0xff]  ;;  %v224_v27 = vld [vmem:[%s634_s3 + $0x30] sm:$0xff]  ;;  %v223_v28 = vld [vmem:[%s634_s3 + $0x28] sm:$0xff] }
  0x10   :  { %394 = vmatprep.subr.mxu1 %v27_v8  ;;  %421 = vmatpush3.msra.mxu0 %v232_v19  ;;  %v222_v29 = vld [vmem:[%s634_s3 + $0x20] sm:$0xff]  ;;  %v221_v30 = vld [vmem:[%s634_s3 + $0x18] sm:$0xff]  ;;  %v220_v31 = vld [vmem:[%s634_s3 + $0x10] sm:$0xff] }
  0x11   :  { %395 = vmatpush3.msra.mxu1 %v27_v8  ;;  %422 = vmatprep.subr.mxu0 %v231_v20  ;;  %v219_v32 = vld [vmem:[%s634_s3 + $0x8] sm:$0xff]  ;;  %v218_v33 = vld [vmem:[%s634_s3] sm:$0xff]  ;;  %s488_s3 = smov [#allocation3]  }
  0x12   :  { %397 = vmatmul.mubr.msk.f32.vlgmr.msra.gmra.mxu1 %vm22_vm0, %v26_v9  ;;  %399 = vmatprep.subr.mxu1 %v124_v10  ;;  %v217_v51 = vld [vmem:[#allocation2 + $0x8] sm:$0xff]  ;;  %v216_v53 = vld [vmem:[#allocation2] sm:$0xff]  ;;  %s325_s26 = sshll.u32 %s488_s3, 4  ;;  %s326_s26 = int_to_ptr.vmem [resolvable:$true] %s325_s26 }
  0x13   :  { %400 = vmatpush3.msra.mxu1 %v124_v10  ;;  %415 = vmatprep.mubr.msk.f32.mxu1 %vm22_vm0, %v25_v3  ;;  %s465_s27 = scalar_lea.vmem %s326_s26, 256  ;;  %p470_p1 = scmp.lt.s32.totalorder %s326_s26, %s326_s26 }
  0x14   :  { %401 = vmatprep.subr.mxu1 %v123_v11  ;;  %423 = vmatpush3.msra.mxu0 %v231_v20  ;;  %p466_p0 = scmp.ne.s32.totalorder %s326_s26, %s465_s27  ;;  %p471_p2 = scmp.lt.s32.totalorder %s465_s27, %s465_s27 }
  0x15   :  { %402 = vmatpush3.msra.mxu1 %v123_v11  ;;  %424 = vmatprep.subr.mxu0 %v230_v21 }
  0x16   :  { %403 = vmatprep.subr.mxu1 %v122_v12  ;;  %425 = vmatpush3.msra.mxu0 %v230_v21  ;;  %p472_p3 = por %p471_p2, %p470_p1 }
  0x17   :  { %404 = vmatpush3.msra.mxu1 %v122_v12  ;;  %426 = vmatprep.subr.mxu0 %v229_v22 }
  0x18   :  { %405 = vmatprep.subr.mxu1 %v121_v13  ;;  %427 = vmatpush3.msra.mxu0 %v229_v22  ;;  %p473_p4 = pnand %p472_p3, %p466_p0 }
  0x19   :  { %406 = vmatpush3.msra.mxu1 %v121_v13  ;;  %428 = vmatprep.subr.mxu0 %v228_v23 }
  0x1a   :  { %407 = vmatprep.subr.mxu1 %v120_v14  ;;  %429 = vmatpush3.msra.mxu0 %v228_v23 }
  0x1b   :  { %408 = vmatpush3.msra.mxu1 %v120_v14  ;;  %430 = vmatprep.subr.mxu0 %v227_v24 }
  0x1c   :  { %409 = vmatprep.subr.mxu1 %v119_v15  ;;  %431 = vmatpush3.msra.mxu0 %v227_v24 }
  0x1d   :  { %410 = vmatpush3.msra.mxu1 %v119_v15  ;;  %432 = vmatprep.subr.mxu0 %v226_v25 }
  0x1e   :  { %411 = vmatprep.subr.mxu1 %v118_v16  ;;  %433 = vmatpush3.msra.mxu0 %v226_v25 }
  0x1f   :  { %412 = vmatpush3.msra.mxu1 %v118_v16  ;;  %434 = vmatprep.subr.mxu0 %v225_v26 }
  0x20   :  { %413 = vmatprep.subr.mxu1 %v117_v17  ;;  %435 = vmatpush3.msra.mxu0 %v225_v26 }
  0x21   :  { %414 = vmatpush3.msra.mxu1 %v117_v17  ;;  %436 = vmatprep.subr.mxu0 %v224_v27 }
  0x22   :  { %416 = vmatmul.mubr.msk.f32.vlgmr.msra.gmra.mxu1 %vm22_vm0, %v26_v9  ;;  %437 = vmatpush3.msra.mxu0 %v224_v27 }
  0x23   :  { %438 = vmatprep.subr.mxu0 %v223_v28 }
  0x24   :  { %439 = vmatpush3.msra.mxu0 %v223_v28 }
  0x25   :  { %440 = vmatprep.subr.mxu0 %v222_v29 }
  0x26   :  { %441 = vmatpush3.msra.mxu0 %v222_v29 }
  0x27   :  { %442 = vmatprep.subr.mxu0 %v221_v30 }
  0x28   :  { %443 = vmatpush3.msra.mxu0 %v221_v30 }
  0x29   :  { %444 = vmatprep.subr.mxu0 %v220_v31 }
  0x2a   :  { %445 = vmatpush3.msra.mxu0 %v220_v31 }
  0x2b   :  { %446 = vmatprep.subr.mxu0 %v219_v32 }
  0x2c   :  { %447 = vmatpush3.msra.mxu0 %v219_v32 }
  0x2d   :  { %448 = vmatprep.subr.mxu0 %v218_v33 }
  0x2e   :  { %449 = vmatpush3.msra.mxu0 %v218_v33 }
  0xd2   :  { %v398_v35 = vpop.f32.mrf.mxu1 }
  0xd3   :  { %v341_v36 = vmul.f32 -1.442695, %v398_v35 }
  0xd4   :  { %v108_v37 = vpop.f32.mrf.mxu1 }
  0xd5   :  { %457 = vpow2.f32 %v341_v36  ;;  %v340_v38 = vmul.f32 -1.442695, %v108_v37 }
  0xd7   :  { %459 = vpow2.f32 %v340_v38 }
  0xe2   :  { %v458_v39 = vpop.eup %457  ;;  %v417_v44 = vpop.f32.mrf.mxu1 }
  0xe3   :  { %v207_v40 = vadd.f32 1.0, %v458_v39 }
  0xe4   :  { %v460_v41 = vpop.eup %459  ;;  %v191_v48 = vpop.f32.mrf.mxu1 }
  0xe5   :  { %461 = vrcp.f32 %v207_v40  ;;  %v206_v42 = vadd.f32 1.0, %v460_v41 }
  0xe7   :  { %463 = vrcp.f32 %v206_v42 }
  0xf2   :  { %v462_v43 = vpop.eup %461 }
  0xf3   :  { %v213_v46 = vmul.f32 %v462_v43, %v398_v35 }
  0xf4   :  { %v464_v45 = vpop.eup %463 }
  0xf5   :  { %v212_v47 = vmul.f32 %v464_v45, %v108_v37  ;;  %v215_v50 = vmul.f32 %v417_v44, %v213_v46 }
  0xf7   :  { %v214_v49 = vmul.f32 %v212_v47, %v191_v48 }
  0xf9   :  { %450 = vmatprep.mubr.f32.mxu0 %v214_v49 }
  0xfa   :  { %451 = vmatmul.mubr.f32.vlgmr.msra.gmra.mxu0 %v215_v50 }
 0x1ba   :  { %v452_v52 = vpop.f32.mrf.mxu0 }
 0x1bb   :  { %v310_v54 = vadd.f32 %v452_v52, %v217_v51 }
 0x1bc   :  { %v300_v55 = vpop.f32.mrf.mxu0 }
 0x1bd   :  { %312 = vst.msk [vmem:[#allocation2 + $0x8] sm:$0xff] %vm22_vm0, %v310_v54  ;;  %v309_v56 = vadd.f32 %v300_v55, %v216_v53 }
 0x1bf   :  { %311 = vst.msk [vmem:[#allocation2] sm:$0xff] %vm22_vm0, %v309_v56 }
 0x1c4   :  { %v317_v57 = vld [vmem:[#allocation2 + $0x8] sm:$0xff] }
 0x1c5   :  { %319 = vst.msk [vmem:[#allocation3 + $0x8] sm:$0xff] %vm22_vm0, %v317_v57 }
 0x1c6   :  { %v316_v58 = vld [vmem:[#allocation2] sm:$0xff] }
 0x1c7   :  { %318 = vst.msk [vmem:[#allocation3] sm:$0xff] %vm22_vm0, %v316_v58 }
 0x1c8   :  { %476 = shalt.err (!%p473_p4)
}
 0x1c9   :  { %s489_s2 = smov 128   ;;  %s490_s28 = smov 8  }
 0x1ca   :  { %331 = dma.vmem_to_hbm [thread:$0]  %s326_s26, 256, %s635_s4, [#allocation4], %s489_s2, %s489_s2, %s490_s28  }
 0x1cb   :  { %485 = dma.done.wait [#allocation4], 256  }
 0x1cc   :  { %486 = vsyncadd [#allocation4], 4294967040 }
 0x1cd   :  { %335 = vsyncpa [#allocation4], 1 }

</bundles_post_ra>
